<compile_context>
chip_gen: v7x
topology: tpu7x:2x2x1
jax: 0.10.0
libtpu: 0.0.40
codegen_flags: <defaults>
</compile_context>

<pallas_src>
import functools

import jax
import jax.numpy as jnp
from jax.experimental import pallas as pl
from jax.experimental.pallas import tpu as pltpu

BALANCE_WEIGHT = (0.95124031, 4.36690391, 1.71143654, 0.25714585,
                  0.6191221, 1.74056738, 0.48617274)
NUM_CLASSES = len(BALANCE_WEIGHT)


def _lsr2_kernel(x_ref, t_ref, w_ref, alpha_ref, coef_ref, out_ref, *,
                 n_valid, tile_n, tiles_per_slice):
    p = pl.program_id(0)        # batch slice (megacore "parallel" axis)
    i = pl.program_id(1)        # batch tile  ("arbitrary" accumulation axis)

    @pl.when(i == 0)
    def _init():
        out_ref[...] = jnp.zeros_like(out_ref)

    x = x_ref[...]              # (C, T) f32 logits, classes on sublanes, batch on lanes
    t = t_ref[...]              # (1, T) i32 targets (lane-dense row)
    w = w_ref[...]              # (C, 1) balance weights
    alpha = alpha_ref[...]      # (C, 1) (1-e) - e*w_c/(W_total - w_c)
    coef = coef_ref[...]        # (C, 1) e/(W_total - w_c)
    c, tn = x.shape

    # one-hot target mask: sublane class iota vs broadcast target row
    cls = jax.lax.broadcasted_iota(jnp.int32, (c, tn), 0)
    one_hot = (cls == t).astype(jnp.float32)                    # (C, T)

    # stabilized logits + log-sum-exp over the class (sublane) axis
    m = jnp.max(x, axis=0, keepdims=True)                       # (1, T)
    z = x - m                                                   # (C, T)
    lse = jnp.log(jnp.sum(jnp.exp(z), axis=0, keepdims=True))   # (1, T)

    # smoothed label reconstructed on the fly (sums to 1 along classes):
    #   sm[c] = onehot[c]*alpha[c] + coef[t]*w[c]
    coef_t = jnp.sum(one_hot * coef, axis=0, keepdims=True)     # (1, T) gather coef[t_i]
    sm = one_hot * alpha + coef_t * w                           # (C, T)

    # loss_i = -sum_c sm[c]*(z[c]-lse) = lse - sum_c z[c]*sm[c]   (since sum_c sm[c] == 1)
    loss = lse - jnp.sum(z * sm, axis=0, keepdims=True)         # (1, T)

    # mask out padded tail columns so they do not contribute to the batch sum
    col0 = (p * tiles_per_slice + i) * tile_n
    col = col0 + jax.lax.broadcasted_iota(jnp.int32, (1, tn), 1)
    loss = jnp.where(col < n_valid, loss, 0.0)

    partial = jnp.sum(loss, axis=1, keepdims=True)              # (1, 1)
    out_ref[...] += jnp.broadcast_to(partial, out_ref.shape)    # per-slice running sum


def lsr2_loss(x, target, smooth_factor, *, tile_n=8192, num_slices=2):
    """x: (N, C) logits, target: (N,) int labels. Returns scalar f32 mean loss."""
    n, c = x.shape
    assert c == NUM_CLASSES, "balance_weight is defined for 7 classes"

    w = jnp.asarray(BALANCE_WEIGHT, dtype=jnp.float32)
    w_total = float(sum(BALANCE_WEIGHT))
    coef = jnp.float32(smooth_factor) / (w_total - w)           # e / (W_total - w_c)
    alpha = jnp.float32(1.0 - smooth_factor) - coef * w         # (1-e) - coef_c * w_c

    # lane-dense layout: batch -> 128-lane axis, classes -> sublanes
    xt = x.astype(jnp.float32).T                                # (C, N)
    t_row = target.astype(jnp.int32).reshape(1, n)              # (1, N)

    # tile sizing: lane-multiple tiles, split the batch across `num_slices` cores
    # (clamped so tiny batches use a single slice and minimal padding)
    num_slices = max(1, min(num_slices, pl.cdiv(n, 128)))
    per_slice = pl.cdiv(n, num_slices)
    tile_req = max(128, ((tile_n + 127) // 128) * 128)
    tile = min(tile_req, ((per_slice + 127) // 128) * 128)
    tiles_per_slice = pl.cdiv(per_slice, tile)
    n_pad = num_slices * tiles_per_slice * tile
    if n_pad != n:
        xt = jnp.pad(xt, ((0, 0), (0, n_pad - n)))
        t_row = jnp.pad(t_row, ((0, 0), (0, n_pad - n)))

    w_col = w.reshape(c, 1)
    alpha_col = alpha.reshape(c, 1)
    coef_col = coef.reshape(c, 1)

    kernel = functools.partial(_lsr2_kernel, n_valid=n, tile_n=tile,
                               tiles_per_slice=tiles_per_slice)

    def batch_map(p, i):
        return (0, p * tiles_per_slice + i)

    out = pl.pallas_call(
        kernel,
        out_shape=jax.ShapeDtypeStruct((1, num_slices * 128), jnp.float32),
        grid_spec=pltpu.PrefetchScalarGridSpec(
            num_scalar_prefetch=0,
            grid=(num_slices, tiles_per_slice),
            in_specs=[
                pl.BlockSpec((c, tile), batch_map),             # logits (C, T)
                pl.BlockSpec((1, tile), batch_map),             # targets (1, T)
                pl.BlockSpec((c, 1), lambda p, i: (0, 0)),      # w
                pl.BlockSpec((c, 1), lambda p, i: (0, 0)),      # alpha
                pl.BlockSpec((c, 1), lambda p, i: (0, 0)),      # coef
            ],
            out_specs=pl.BlockSpec((1, 128), lambda p, i: (0, p)),
        ),
        compiler_params=pltpu.CompilerParams(
            dimension_semantics=("parallel", "arbitrary"),
        ),
    )(xt, t_row, w_col, alpha_col, coef_col)

    partials = out.reshape(num_slices, 128)[:, 0]               # one partial sum per slice
    return jnp.sum(partials) / jnp.float32(n)                   # divide by the TRUE batch size


def lsr2_reference(x, target, smooth_factor):
    """Pure-JAX reference mirroring the PyTorch module."""
    n, c = x.shape
    w = jnp.asarray(BALANCE_WEIGHT, dtype=jnp.float32)
    one_hot = jax.nn.one_hot(target, c, dtype=jnp.float32)
    w_masked = jnp.where(one_hot > 0, 0.0, w[None, :])
    denom = jnp.sum(w_masked, axis=1, keepdims=True)
    smoothed = jnp.where(one_hot > 0, 1.0 - smooth_factor,
                         smooth_factor * w_masked / denom)
    logp = jax.nn.log_softmax(x, axis=1)
    return jnp.mean(jnp.sum(-logp * smoothed, axis=1))


if __name__ == "__main__":
    key = jax.random.PRNGKey(0)
    e = 0.1

    ok = True
    # (N=8): small case -> single slice, lane padding/masking.
    # (N=1000, tile=128): two slices, multi-tile accumulation + non-multiple tail masking.
    for n, tn in ((8, 8192), (1000, 128)):
        kx, kt, key = jax.random.split(key, 3)
        x = jax.random.normal(kx, (n, NUM_CLASSES), dtype=jnp.float32)
        target = jax.random.randint(kt, (n,), 0, NUM_CLASSES, dtype=jnp.int32)

        loss = jax.block_until_ready(lsr2_loss(x, target, e, tile_n=tn))
        ref = jax.block_until_ready(lsr2_reference(x, target, e))
        ok = ok and bool(jnp.allclose(loss, ref, atol=1e-5, rtol=1e-5))

    assert ok
    print("KERNEL_OK")
</pallas_src>

<mosaic_0001>
module attributes {stable_mosaic.version = 11 : i64} {
  func.func @_lsr2_kernel(%arg0: i32, %arg1: i32, %arg2: memref<7x128xf32, #tpu.memory_space<vmem>>, %arg3: memref<1x128xi32, #tpu.memory_space<vmem>>, %arg4: memref<7x1xf32, #tpu.memory_space<vmem>>, %arg5: memref<7x1xf32, #tpu.memory_space<vmem>>, %arg6: memref<7x1xf32, #tpu.memory_space<vmem>>, %arg7: memref<1x128xf32, #tpu.memory_space<vmem>>) attributes {dimension_semantics = [#tpu.dimension_semantics<parallel>, #tpu.dimension_semantics<arbitrary>], iteration_bounds = array<i64: 1, 1>, scalar_prefetch = 0 : i64, scratch_operands = 0 : i64, tpu.core_type = #tpu.core_type<tc>, window_params = [{transform_indices = @transform_0, window_bounds = array<i64: 7, 128>}, {transform_indices = @transform_1, window_bounds = array<i64: 1, 128>}, {pipeline_mode = #tpu.pipeline_mode<synchronous>, transform_indices = @transform_2, window_bounds = array<i64: 7, 1>}, {pipeline_mode = #tpu.pipeline_mode<synchronous>, transform_indices = @transform_3, window_bounds = array<i64: 7, 1>}, {pipeline_mode = #tpu.pipeline_mode<synchronous>, transform_indices = @transform_4, window_bounds = array<i64: 7, 1>}, {transform_indices = @transform_5, window_bounds = array<i64: 1, 128>}]} {
    %c0_i32 = arith.constant 0 : i32
    %0 = arith.cmpi eq, %arg1, %c0_i32 : i32
    %1 = arith.extui %0 : i1 to i32
    %c0_i32_0 = arith.constant 0 : i32
    %2 = arith.cmpi ne, %1, %c0_i32_0 : i32
    scf.if %2 {
      %cst_19 = arith.constant 0.000000e+00 : f32
      %52 = vector.broadcast %cst_19 : f32 to vector<1x128xf32>
      %c0_20 = arith.constant 0 : index
      %c0_21 = arith.constant 0 : index
      %53 = vector.load %arg7[%c0_20, %c0_21] : memref<1x128xf32, #tpu.memory_space<vmem>>, vector<1x128xf32>
      tpu.vector_store %arg7[%c0_20, %c0_21], %52 {strides = array<i32>} : memref<1x128xf32, #tpu.memory_space<vmem>>, vector<1x128xf32>,
    } else {
    }
    %c0 = arith.constant 0 : index
    %c0_1 = arith.constant 0 : index
    %3 = vector.load %arg2[%c0, %c0_1] : memref<7x128xf32, #tpu.memory_space<vmem>>, vector<7x128xf32>
    %c0_2 = arith.constant 0 : index
    %c0_3 = arith.constant 0 : index
    %4 = vector.load %arg3[%c0_2, %c0_3] : memref<1x128xi32, #tpu.memory_space<vmem>>, vector<1x128xi32>
    %c0_4 = arith.constant 0 : index
    %c0_5 = arith.constant 0 : index
    %5 = vector.load %arg4[%c0_4, %c0_5] : memref<7x1xf32, #tpu.memory_space<vmem>>, vector<7x1xf32>
    %c0_6 = arith.constant 0 : index
    %c0_7 = arith.constant 0 : index
    %6 = vector.load %arg5[%c0_6, %c0_7] : memref<7x1xf32, #tpu.memory_space<vmem>>, vector<7x1xf32>
    %c0_8 = arith.constant 0 : index
    %c0_9 = arith.constant 0 : index
    %7 = vector.load %arg6[%c0_8, %c0_9] : memref<7x1xf32, #tpu.memory_space<vmem>>, vector<7x1xf32>
    %8 = tpu.iota {dimensions = array<i32: 0>} : vector<7x128xi32>
    %9 = vector.broadcast %4 : vector<1x128xi32> to vector<7x128xi32>
    %10 = arith.cmpi eq, %8, %9 : vector<7x128xi32>
    %11 = arith.extui %10 : vector<7x128xi1> to vector<7x128xi32>
    %12 = arith.sitofp %11 : vector<7x128xi32> to vector<7x128xf32>
    %cst = arith.constant dense<0xFF800000> : vector<128xf32>
    %13 = vector.multi_reduction <maximumf>, %3, %cst [0] : vector<7x128xf32> to vector<128xf32>
    %14 = vector.shape_cast %13 : vector<128xf32> to vector<1x128xf32>
    %15 = vector.broadcast %14 : vector<1x128xf32> to vector<7x128xf32>
    %16 = arith.subf %3, %15 : vector<7x128xf32>
    %17 = math.exp %16 : vector<7x128xf32>
    %cst_10 = arith.constant dense<0.000000e+00> : vector<128xf32>
    %18 = vector.multi_reduction <add>, %17, %cst_10 [0] : vector<7x128xf32> to vector<128xf32>
    %19 = vector.shape_cast %18 : vector<128xf32> to vector<1x128xf32>
    %20 = math.log %19 : vector<1x128xf32>
    %21 = vector.broadcast %7 : vector<7x1xf32> to vector<7x128xf32>
    %22 = arith.mulf %12, %21 : vector<7x128xf32>
    %cst_11 = arith.constant dense<0.000000e+00> : vector<128xf32>
    %23 = vector.multi_reduction <add>, %22, %cst_11 [0] : vector<7x128xf32> to vector<128xf32>
    %24 = vector.shape_cast %23 : vector<128xf32> to vector<1x128xf32>
    %25 = vector.broadcast %6 : vector<7x1xf32> to vector<7x128xf32>
    %26 = arith.mulf %12, %25 : vector<7x128xf32>
    %27 = vector.broadcast %24 : vector<1x128xf32> to vector<7x128xf32>
    %28 = vector.broadcast %5 : vector<7x1xf32> to vector<7x128xf32>
    %29 = arith.mulf %27, %28 : vector<7x128xf32>
    %30 = arith.addf %26, %29 : vector<7x128xf32>
    %31 = arith.mulf %16, %30 : vector<7x128xf32>
    %cst_12 = arith.constant dense<0.000000e+00> : vector<128xf32>
    %32 = vector.multi_reduction <add>, %31, %cst_12 [0] : vector<7x128xf32> to vector<128xf32>
    %33 = vector.shape_cast %32 : vector<128xf32> to vector<1x128xf32>
    %34 = arith.subf %20, %33 : vector<1x128xf32>
    %c1_i32 = arith.constant 1 : i32
    %35 = arith.muli %arg0, %c1_i32 : i32
    %36 = arith.addi %35, %arg1 : i32
    %c128_i32 = arith.constant 128 : i32
    %37 = arith.muli %36, %c128_i32 : i32
    %38 = tpu.iota {dimensions = array<i32: 1>} : vector<1x128xi32>
    %39 = vector.broadcast %37 : i32 to vector<1x128xi32>
    %40 = arith.addi %39, %38 : vector<1x128xi32>
    %c8_i32 = arith.constant 8 : i32
    %41 = vector.broadcast %c8_i32 : i32 to vector<1x128xi32>
    %42 = arith.cmpi slt, %40, %41 : vector<1x128xi32>
    %cst_13 = arith.constant 0.000000e+00 : f32
    %43 = vector.broadcast %cst_13 : f32 to vector<1x128xf32>
    %44 = arith.select %42, %34, %43 : vector<1x128xi1>, vector<1x128xf32>
    %cst_14 = arith.constant dense<0.000000e+00> : vector<1xf32>
    %45 = vector.multi_reduction <add>, %44, %cst_14 [1] : vector<1x128xf32> to vector<1xf32>
    %46 = vector.shape_cast %45 : vector<1xf32> to vector<1x1xf32>
    %c0_15 = arith.constant 0 : index
    %c0_16 = arith.constant 0 : index
    %47 = vector.load %arg7[%c0_15, %c0_16] : memref<1x128xf32, #tpu.memory_space<vmem>>, vector<1x128xf32>
    %48 = vector.shape_cast %46 : vector<1x1xf32> to vector<1x1xf32>
    %49 = vector.broadcast %48 : vector<1x1xf32> to vector<1x128xf32>
    %50 = arith.addf %47, %49 : vector<1x128xf32>
    %c0_17 = arith.constant 0 : index
    %c0_18 = arith.constant 0 : index
    %51 = vector.load %arg7[%c0_17, %c0_18] : memref<1x128xf32, #tpu.memory_space<vmem>>, vector<1x128xf32>
    tpu.vector_store %arg7[%c0_17, %c0_18], %50 {strides = array<i32>} : memref<1x128xf32, #tpu.memory_space<vmem>>, vector<1x128xf32>,
    return
  }
  func.func @transform_0(%arg0: i32, %arg1: i32) -> (i32, i32) {
    %c1_i32 = arith.constant 1 : i32
    %0 = arith.muli %arg0, %c1_i32 : i32
    %1 = arith.addi %0, %arg1 : i32
    %c0_i32 = arith.constant 0 : i32
    %c0_i32_0 = arith.constant 0 : i32
    return %c0_i32, %1 : i32, i32
  }
  func.func @transform_1(%arg0: i32, %arg1: i32) -> (i32, i32) {
    %c1_i32 = arith.constant 1 : i32
    %0 = arith.muli %arg0, %c1_i32 : i32
    %1 = arith.addi %0, %arg1 : i32
    %c0_i32 = arith.constant 0 : i32
    %c0_i32_0 = arith.constant 0 : i32
    return %c0_i32, %1 : i32, i32
  }
  func.func @transform_2(%arg0: i32, %arg1: i32) -> (i32, i32) {
    %c0_i32 = arith.constant 0 : i32
    %c0_i32_0 = arith.constant 0 : i32
    %c0_i32_1 = arith.constant 0 : i32
    return %c0_i32, %c0_i32_0 : i32, i32
  }
  func.func @transform_3(%arg0: i32, %arg1: i32) -> (i32, i32) {
    %c0_i32 = arith.constant 0 : i32
    %c0_i32_0 = arith.constant 0 : i32
    %c0_i32_1 = arith.constant 0 : i32
    return %c0_i32, %c0_i32_0 : i32, i32
  }
  func.func @transform_4(%arg0: i32, %arg1: i32) -> (i32, i32) {
    %c0_i32 = arith.constant 0 : i32
    %c0_i32_0 = arith.constant 0 : i32
    %c0_i32_1 = arith.constant 0 : i32
    return %c0_i32, %c0_i32_0 : i32, i32
  }
  func.func @transform_5(%arg0: i32, %arg1: i32) -> (i32, i32) {
    %c0_i32 = arith.constant 0 : i32
    %c0_i32_0 = arith.constant 0 : i32
    return %c0_i32, %arg0 : i32, i32
  }
}

</mosaic_0001>

<bundles_post_ra>
// kernel: tpu_custom_call.1
= control target key start
LH: loop header
LB: loop body
LE: loop exit
PB: predicated region body
PF: predicated region fallthrough
CT: control target
= control target key end

     0   :  { %v197_v1 = vmov 0   ;;  %v198_v3 = vmov 0.0   ;;  %s261_s0 = inlined_call_operand.vmem [shape: f32[7,128], index: 0, kind: input, shape index: {}]   ;;  %s262_s1 = inlined_call_operand.vmem [shape: s32[1,128], index: 1, kind: input, shape index: {}]   ;;  %s263_s2 = inlined_call_operand.vmem [shape: f32[7,1], index: 2, kind: input, shape index: {}]   ;;  %s264_s3 = inlined_call_operand.vmem [shape: f32[7,1], index: 3, kind: input, shape index: {}]   ;;  %s265_s4 = inlined_call_operand.vmem [shape: f32[7,1], index: 4, kind: input, shape index: {}]   ;;  %s266_s5 = inlined_call_operand.hbm [shape: f32[1,128], index: 5, kind: output, shape index: {}]  }
   0x1   :  { %v61_v0 = vld [vmem:[%s265_s4] sm:$0x7f]  ;;  %167 = vset.pattern.permute.xlu0 %v197_v1  ;;  %168 = vset.pattern.permute.xlu1 %v197_v1  ;;  %56 = vst [vmem:[#allocation2] sm:$0x1] %v198_v3 }
   0x2   :  { %v59_v2 = vld [vmem:[%s263_s2] sm:$0x7f]  ;;  %93 = vperm.xlu0 %167, %v61_v0  }
   0x3   :  { %112 = vperm.xlu1 %168, %v59_v2  }
   0x4   :  { %10 = vsyncpa [#allocation3], 0  ;;  %v60_v4 = vld [vmem:[%s264_s3] sm:$0x7f]  ;;  %vm71_vm0 = vcmask 1046528   ;;  %v62_v15 = vlaneseq }
   0x5   :  { %v57_v5 = vld [vmem:[%s261_s0] sm:$0x7f]  ;;  %s199_s0 = smov [#allocation2]  }
   0x6   :  { %106 = vperm.xlu0 %167, %v60_v4   ;;  %v72_v6 = vsel %vm71_vm0, %v57_v5, -inf  ;;  %v63_v17 = vshrl.u32 %v62_v15, 7  ;;  %v162_v19 = vld [vmem:[%s262_s1] ss:$0 sm:$0xff]  ;;  %v129_v48 = vand.u32 127, %v62_v15  ;;  %s145_s1 = sshll.u32 %s199_s0, 4  ;;  %s146_s1 = int_to_ptr.vmem [resolvable:$true] %s145_s1 }
   0x7   :  { %v73_v7 = vrot.slane %v72_v6, 4  ;;  %s173_s25 = scalar_lea.vmem %s146_s1, 16  ;;  %s177_s26 = scalar_lea.vmem %s146_s1, 32 }
   0x8   :  { %vm68_vm1 = vcmp.eq.s32.totalorder %v63_v17, %v162_v19  ;;  %vm132_vm2 = vcmp.lt.s32.totalorder %v129_v48, 8  ;;  %v136_v54 = vld [vmem:[#allocation2] sm:$0x1]  ;;  %p174_p0 = scmp.ne.s32.totalorder %s146_s1, %s173_s25  ;;  %p178_p1 = scmp.lt.s32.totalorder %s146_s1, %s146_s1 }
   0x9   :  { %v74_v8 = vmax.f32 %v72_v6, %v73_v7  ;;  %v163_v21 = vsel %vm68_vm1, 1.0, %v198_v3  ;;  %p179_p2 = scmp.lt.s32.totalorder %s177_s26, %s173_s25 }
   0xb   :  { %v75_v9 = vrot.slane %v74_v8, 2  ;;  %p180_p3 = por %p179_p2, %p178_p1 }
   0xd   :  { %v76_v10 = vmax.f32 %v74_v8, %v75_v9  ;;  %p181_p4 = pnand %p180_p3, %p174_p0 }
   0xf   :  { %v77_v11 = vrot.slane %v76_v10, 1 }
  0x11   :  { %v78_v12 = vmax.f32 %v76_v10, %v77_v11 }
  0x13   :  { %v79_v13 = vsub.f32 %v57_v5, %v78_v12 }
  0x15   :  { %v80_v14 = vmul.f32 1.442695, %v79_v13 }
  0x17   :  { %169 = vpow2.f32 %v80_v14 }
  0x21   :  { %v170_v16 = vpop.eup %169 }
  0x22   :  { %v82_v18 = vsel %vm71_vm0, %v170_v16, 0.0 }
  0x23   :  { %v83_v20 = vrot.slane %v82_v18, 4 }
  0x25   :  { %v84_v22 = vadd.f32 %v83_v20, %v82_v18 }
  0x27   :  { %v85_v25 = vrot.slane %v84_v22, 2 }
  0x29   :  { %v86_v29 = vadd.f32 %v85_v25, %v84_v22 }
  0x2b   :  { %v87_v32 = vrot.slane %v86_v29, 1 }
  0x2d   :  { %v88_v37 = vadd.f32 %v87_v32, %v86_v29 }
  0x2f   :  { %171 = vlog2.f32 %v88_v37 }
  0x39   :  { %v172_v46 = vpop.eup %171 }
  0x3a   :  { %v90_v49 = vmul.f32 0.6931472, %v172_v46 }
  0x81   :  { %v94_v23 = vpop.permute.xlu0 %93 }
  0x82   :  { %v96_v24 = vmul.f32 %v163_v21, %v94_v23  ;;  %v113_v35 = vpop.permute.xlu1 %112 }
  0x84   :  { %v97_v26 = vsel %vm71_vm0, %v96_v24, 0.0 }
  0x85   :  { %v98_v27 = vrot.slane %v97_v26, 4  ;;  %v107_v34 = vpop.permute.xlu0 %106 }
  0x86   :  { %v109_v38 = vmul.f32 %v163_v21, %v107_v34 }
  0x87   :  { %v99_v28 = vadd.f32 %v98_v27, %v97_v26 }
  0x89   :  { %v100_v30 = vrot.slane %v99_v28, 2 }
  0x8b   :  { %v101_v31 = vadd.f32 %v100_v30, %v99_v28 }
  0x8d   :  { %v102_v33 = vrot.slane %v101_v31, 1 }
  0x8f   :  { %v103_v36 = vadd.f32 %v102_v33, %v101_v31 }
  0x91   :  { %v115_v39 = vmul.f32 %v113_v35, %v103_v36 }
  0x93   :  { %v116_v40 = vadd.f32 %v115_v39, %v109_v38 }
  0x95   :  { %v117_v41 = vmul.f32 %v116_v40, %v79_v13 }
  0x97   :  { %v118_v42 = vsel %vm71_vm0, %v117_v41, 0.0 }
  0x98   :  { %v119_v43 = vrot.slane %v118_v42, 4 }
  0x9a   :  { %v120_v44 = vadd.f32 %v119_v43, %v118_v42 }
  0x9c   :  { %v121_v45 = vrot.slane %v120_v44, 2 }
  0x9e   :  { %v122_v47 = vadd.f32 %v121_v45, %v120_v44 }
  0xa0   :  { %v123_v50 = vrot.slane %v122_v47, 1 }
  0xa2   :  { %v124_v51 = vadd.f32 %v123_v50, %v122_v47 }
  0xa4   :  { %v125_v52 = vsub.f32 %v90_v49, %v124_v51 }
  0xa6   :  { %v133_v53 = vsel %vm132_vm2, %v125_v52, 0.0 }
  0xa7   :  { %134 = vadd.xlane.f32.xlu1 %v133_v53 }
 0x134   :  { %v135_v55 = vpop.xlane.xlu1 %134 }
 0x135   :  { %v137_v56 = vadd.f32 %v136_v54, %v135_v55 }
 0x137   :  { %138 = vst [vmem:[#allocation2] sm:$0x1] %v137_v56 }
 0x138   :  { %184 = shalt.err (!%p181_p4)
}
 0x139   :  { %s185_s29 = scalar_lea.hbm %s266_s5, 16 }
 0x13a   :  { %p186_p5 = scmp.ne.s32.totalorder %s266_s5, %s185_s29  ;;  %p189_p6 = scmp.lt.u32.totalorder %s185_s29, %s266_s5 }
 0x13c   :  { %p191_p7 = pnand %p189_p6, %p186_p5 }
 0x13e   :  { %194 = shalt.err (!%p191_p7)
}
 0x13f   :  { %148 = dma.vmem_to_hbm [thread:$0]  %s146_s1, 16, %s266_s5, [#allocation3]  }
 0x140   :  { %195 = dma.done.wait [#allocation3], 16  }
 0x141   :  { %196 = vsyncadd [#allocation3], 4294967280 }
 0x142   :  { %152 = vsyncpa [#allocation3], 1 }

</bundles_post_ra>
